<compile_context>
chip_gen: v7x
topology: tpu7x:2x2x1
jax: 0.10.0
libtpu: 0.0.40
codegen_flags: <defaults>
</compile_context>

<pallas_src>
import functools

import jax
import jax.numpy as jnp
from jax import lax
from jax.experimental import pallas as pl
from jax.experimental.pallas import tpu as pltpu

block_size = 32
embed_dim = 32
head_dim = 16


def _attn_head_kernel(x_ref, wqkv_ref, attn_ref, w_ref, *, scale, autoregression):
    # x_ref    : (Bb, T, C)   input tile
    # wqkv_ref : (C, 3H)      fused, pre-transposed projection weights
    # attn_ref : (Bb, T, H)
    # w_ref    : (Bb, T, T)
    x = x_ref[...]
    Bb, T, C = x.shape
    H = wqkv_ref.shape[1] // 3

    # Single fused QKV projection on the MXU (one weight push, 3H-wide result).
    x2 = x.reshape(Bb * T, C)
    qkv = jnp.dot(x2, wqkv_ref[...], preferred_element_type=jnp.float32)   # (Bb*T, 3H)
    q = qkv[:, 0 * H:1 * H].reshape(Bb, T, H)
    k = qkv[:, 1 * H:2 * H].reshape(Bb, T, H)
    v = qkv[:, 2 * H:3 * H].reshape(Bb, T, H)

    # logits[b, i, j] = k[b, i, :] . q[b, j, :]   (== einsum('btc,bTc->bTt', q, k))
    logits = jnp.einsum('bih,bjh->bij', k, q,
                        preferred_element_type=jnp.float32) * scale        # (Bb, T, T)

    if autoregression:
        # Finite additive causal bias (one vadd per element) instead of a
        # -inf select; the diagonal is never masked so every softmax row has
        # a finite max and exp(-1e30 - m) underflows to exactly 0.
        row = lax.broadcasted_iota(jnp.int32, (T, T), 0)
        col = lax.broadcasted_iota(jnp.int32, (T, T), 1)
        bias = jnp.where(col > row, jnp.float32(-1e30), jnp.float32(0.0))   # (T, T)
        logits = logits + bias[None, :, :]

    # Numerically stable softmax; per-row reciprocal (EUP slot) + broadcast
    # multiply instead of a full (Bb, T, T) VPU divide.
    m = jnp.max(logits, axis=-1, keepdims=True)                            # (Bb, T, 1)
    e = jnp.exp(logits - m)
    s = jnp.sum(e, axis=-1, keepdims=True)
    inv = pl.reciprocal(s, approx=False)          # exact: keeps 1e-5 tolerance
    weights = e * inv                                                      # (Bb, T, T)

    # einsum('btt,btc->btc', weights, v) uses only the diagonal of `weights`.
    # Compute it directly (the diagonal is never masked): a (Bb,T,H) multiply
    # + 16-lane reduce instead of an eye-mask multiply + T-wide reduce.
    diag_logit = jnp.sum(q * k, axis=-1, keepdims=True) * scale            # (Bb, T, 1)
    diag = jnp.exp(diag_logit - m) * inv          # == weights[b, t, t]
    attention = diag * v                                                   # (Bb, T, H)

    attn_ref[...] = attention.astype(attn_ref.dtype)
    w_ref[...] = weights.astype(w_ref.dtype)


def self_attention_head(x, wq, wk, wv, *, autoregression=True,
                        blk_size=block_size, batch_block=256, use_bf16=False):
    """x: (B, T, C) f32; wq/wk/wv: (H, C) f32 (PyTorch nn.Linear weight layout).

    Returns (attention (B, T, H), weights (B, T, T)), both float32.
    `batch_block` is the primary perf knob (rows per grid step); it is capped
    by a VMEM budget that is safe on v5e/v6e (128 MiB) and v7x (64 MiB).
    """
    B, T, C = x.shape
    assert T == blk_size, f"T ({T}) must equal block_size ({blk_size})"
    H, C_w = wq.shape
    assert C_w == C and wk.shape == (H, C) and wv.shape == (H, C)

    # Fuse the three projection weights into one pre-transposed (C, 3H) operand
    # so the kernel does a single lane-aligned MXU matmul, no in-kernel transpose.
    wqkv_t = jnp.concatenate([wq.T, wk.T, wv.T], axis=1).astype(jnp.float32)  # (C, 3H)

    in_dtype = jnp.bfloat16 if use_bf16 else jnp.float32   # bf16: relax tolerances
    x_in = x.astype(in_dtype)
    w_in = wqkv_t.astype(in_dtype)
    itemsize = jnp.dtype(in_dtype).itemsize

    # --- batch-block sizing --------------------------------------------------
    # Per-batch-row VMEM: double-buffered in/out tiles + fused-body f32
    # intermediates (x2, qkv, q/k/v, logits, e, weights, row stats).
    per_row = (2 * itemsize * T * C                       # input tile, 2 buffers
               + 2 * 4 * (T * H + T * T)                  # output tiles, 2 buffers
               + 4 * (T * C + 6 * T * H + 3 * T * T + 4 * T))
    per_row = int(per_row * 1.5)                          # compiler / spill headroom
    vmem_budget = 28 * 1024 * 1024                        # safe on every generation
    cap_rows = max(1, vmem_budget // per_row)

    # >= 2 grid steps whenever B >= 2 so v7x's two TensorCores both get work
    # (no cost on v5e/v6e: still one big block per step).
    Bb = int(max(1, min(batch_block, cap_rows, pl.cdiv(B, 2), B)))
    grid = (pl.cdiv(B, Bb),)
    # NOTE: if B % Bb != 0 the padded tail rows compute exp() of undefined data;
    # those rows are discarded by the masked writeback, so outputs are correct.

    vmem_limit = int(min(48 * 1024 * 1024,                # < v7x 64 MiB physical
                         max(32 * 1024 * 1024, Bb * per_row + (1 << 20))))

    scale = 1.0 / (C ** 0.5)
    kernel = functools.partial(_attn_head_kernel, scale=scale,
                               autoregression=autoregression)

    flops = B * (2 * T * C * 3 * H + 2 * T * T * H + 6 * T * T + 4 * T * H)
    bytes_accessed = (itemsize * (B * T * C + C * 3 * H)
                      + 4 * (B * T * H + B * T * T))
    cost = pl.CostEstimate(flops=flops, transcendentals=B * (T * T + T),
                           bytes_accessed=bytes_accessed)

    return pl.pallas_call(
        kernel,
        out_shape=(jax.ShapeDtypeStruct((B, T, H), jnp.float32),
                   jax.ShapeDtypeStruct((B, T, T), jnp.float32)),
        grid_spec=pltpu.PrefetchScalarGridSpec(
            num_scalar_prefetch=0,
            grid=grid,
            in_specs=[
                pl.BlockSpec((Bb, T, C), lambda b: (b, 0, 0)),
                pl.BlockSpec((C, 3 * H), lambda b: (0, 0)),   # same block every step
            ],
            out_specs=[
                pl.BlockSpec((Bb, T, H), lambda b: (b, 0, 0)),
                pl.BlockSpec((Bb, T, T), lambda b: (b, 0, 0)),
            ],
        ),
        compiler_params=pltpu.CompilerParams(
            dimension_semantics=("parallel",),
            vmem_limit_bytes=vmem_limit),
        cost_estimate=cost,
    )(x_in, w_in)


def reference(x, wq, wk, wv, *, autoregression=True):
    """Pure-JAX reference matching the PyTorch forward exactly."""
    B, T, C = x.shape
    q = x @ wq.T
    k = x @ wk.T
    v = x @ wv.T
    logits = jnp.einsum('btc,bTc->bTt', q, k) / (C ** 0.5)
    if autoregression:
        mask = jnp.tril(jnp.ones((T, T), dtype=jnp.float32))
        logits = jnp.where(mask[None, :, :] == 0, -jnp.inf, logits)
    weights = jax.nn.softmax(logits, axis=-1)
    diag = jnp.diagonal(weights, axis1=-2, axis2=-1)          # weights[b, t, t]
    attention = diag[:, :, None] * v                          # 'btt,btc->btc'
    return attention, weights


if __name__ == "__main__":
    key = jax.random.PRNGKey(0)
    B, T, C, H = 2, block_size, embed_dim, head_dim           # T must == block_size
    kx, kq, kk, kv = jax.random.split(key, 4)

    x = jax.random.normal(kx, (B, T, C), dtype=jnp.float32)
    wq = jax.random.normal(kq, (H, C), dtype=jnp.float32) * (1.0 / C ** 0.5)
    wk = jax.random.normal(kk, (H, C), dtype=jnp.float32) * (1.0 / C ** 0.5)
    wv = jax.random.normal(kv, (H, C), dtype=jnp.float32) * (1.0 / C ** 0.5)

    attn, weights = self_attention_head(x, wq, wk, wv, autoregression=True)
    attn = jax.block_until_ready(attn)
    weights = jax.block_until_ready(weights)

    ref_attn, ref_w = reference(x, wq, wk, wv, autoregression=True)

    assert attn.shape == (B, T, H), attn.shape
    assert weights.shape == (B, T, T), weights.shape
    assert jnp.allclose(weights, ref_w, atol=1e-5, rtol=1e-5), "weights mismatch"
    assert jnp.allclose(attn, ref_attn, atol=1e-5, rtol=1e-5), "attention mismatch"

    print("KERNEL_OK")
</pallas_src>

<mosaic_0001>
module attributes {stable_mosaic.version = 11 : i64} {
  func.func @_attn_head_kernel(%arg0: i32, %arg1: memref<1x32x32xf32, #tpu.memory_space<vmem>>, %arg2: memref<32x48xf32, #tpu.memory_space<vmem>>, %arg3: memref<1x32x16xf32, #tpu.memory_space<vmem>>, %arg4: memref<1x32x32xf32, #tpu.memory_space<vmem>>) attributes {dimension_semantics = [#tpu.dimension_semantics<parallel>], iteration_bounds = array<i64: 2>, scalar_prefetch = 0 : i64, scratch_operands = 0 : i64, tpu.core_type = #tpu.core_type<tc>, window_params = [{transform_indices = @transform_0, window_bounds = array<i64: 1, 32, 32>}, {pipeline_mode = #tpu.pipeline_mode<synchronous>, transform_indices = @transform_1, window_bounds = array<i64: 32, 48>}, {transform_indices = @transform_2, window_bounds = array<i64: 1, 32, 16>}, {transform_indices = @transform_3, window_bounds = array<i64: 1, 32, 32>}]} {
    %c0 = arith.constant 0 : index
    %c0_0 = arith.constant 0 : index
    %c0_1 = arith.constant 0 : index
    %0 = vector.load %arg1[%c0, %c0_0, %c0_1] : memref<1x32x32xf32, #tpu.memory_space<vmem>>, vector<1x32x32xf32>
    %1 = vector.shape_cast %0 : vector<1x32x32xf32> to vector<32x32xf32>
    %c0_2 = arith.constant 0 : index
    %c0_3 = arith.constant 0 : index
    %2 = vector.load %arg2[%c0_2, %c0_3] : memref<32x48xf32, #tpu.memory_space<vmem>>, vector<32x48xf32>
    %cst = arith.constant dense<0.000000e+00> : vector<32x48xf32>
    %3 = tpu.matmul %1, %2, %cst {dimension_numbers = #tpu.dot_dimension_numbers<[1], [0], [0], [1], [0, 0, 1, 1], [], []>} : vector<32x32xf32>, vector<32x48xf32>, vector<32x48xf32> -> vector<32x48xf32>
    %4 = vector.extract_strided_slice %3 {offsets = [0, 0], sizes = [32, 16], strides = [1, 1]} : vector<32x48xf32> to vector<32x16xf32>
    %5 = vector.shape_cast %4 : vector<32x16xf32> to vector<1x32x16xf32>
    %6 = vector.extract_strided_slice %3 {offsets = [0, 16], sizes = [32, 16], strides = [1, 1]} : vector<32x48xf32> to vector<32x16xf32>
    %7 = vector.shape_cast %6 : vector<32x16xf32> to vector<1x32x16xf32>
    %8 = vector.extract_strided_slice %3 {offsets = [0, 32], sizes = [32, 16], strides = [1, 1]} : vector<32x48xf32> to vector<32x16xf32>
    %9 = vector.shape_cast %8 : vector<32x16xf32> to vector<1x32x16xf32>
    "tpu.trace_start"() <{level = 10 : i32, message = "bih,bjh->bij"}> : () -> ()
    %cst_4 = arith.constant dense<0.000000e+00> : vector<1x32x32xf32>
    %10 = tpu.matmul %7, %5, %cst_4 {dimension_numbers = #tpu.dot_dimension_numbers<[2], [2], [1], [1], [0, 0, 0, 1, 1, 1], [0], [0]>} : vector<1x32x16xf32>, vector<1x32x16xf32>, vector<1x32x32xf32> -> vector<1x32x32xf32>
    "tpu.trace_stop"() : () -> ()
    %cst_5 = arith.constant 0.176776692 : f32
    %11 = vector.broadcast %cst_5 : f32 to vector<1x32x32xf32>
    %12 = arith.mulf %10, %11 : vector<1x32x32xf32>
    %13 = tpu.iota {dimensions = array<i32: 0>} : vector<32x32xi32>
    %14 = tpu.iota {dimensions = array<i32: 1>} : vector<32x32xi32>
    %15 = arith.cmpi sgt, %14, %13 : vector<32x32xi32>
    %cst_6 = arith.constant -1.000000e+30 : f32
    %cst_7 = arith.constant 0.000000e+00 : f32
    %16 = vector.broadcast %cst_6 : f32 to vector<32x32xf32>
    %17 = vector.broadcast %cst_7 : f32 to vector<32x32xf32>
    %18 = arith.select %15, %16, %17 : vector<32x32xi1>, vector<32x32xf32>
    %19 = vector.shape_cast %18 : vector<32x32xf32> to vector<1x32x32xf32>
    %20 = arith.addf %12, %19 : vector<1x32x32xf32>
    %cst_8 = arith.constant dense<0xFF800000> : vector<1x32xf32>
    %21 = vector.multi_reduction <maximumf>, %20, %cst_8 [2] : vector<1x32x32xf32> to vector<1x32xf32>
    %22 = vector.shape_cast %21 : vector<1x32xf32> to vector<1x32x1xf32>
    %23 = vector.broadcast %22 : vector<1x32x1xf32> to vector<1x32x32xf32>
    %24 = arith.subf %20, %23 : vector<1x32x32xf32>
    %25 = math.exp %24 : vector<1x32x32xf32>
    %cst_9 = arith.constant dense<0.000000e+00> : vector<1x32xf32>
    %26 = vector.multi_reduction <add>, %25, %cst_9 [2] : vector<1x32x32xf32> to vector<1x32xf32>
    %27 = vector.shape_cast %26 : vector<1x32xf32> to vector<1x32x1xf32>
    %28 = tpu.reciprocal %27 : vector<1x32x1xf32> -> vector<1x32x1xf32>
    %29 = vector.broadcast %28 : vector<1x32x1xf32> to vector<1x32x32xf32>
    %30 = arith.mulf %25, %29 : vector<1x32x32xf32>
    %31 = arith.mulf %5, %7 : vector<1x32x16xf32>
    %cst_10 = arith.constant dense<0.000000e+00> : vector<1x32xf32>
    %32 = vector.multi_reduction <add>, %31, %cst_10 [2] : vector<1x32x16xf32> to vector<1x32xf32>
    %33 = vector.shape_cast %32 : vector<1x32xf32> to vector<1x32x1xf32>
    %cst_11 = arith.constant 0.176776692 : f32
    %34 = vector.broadcast %cst_11 : f32 to vector<1x32x1xf32>
    %35 = arith.mulf %33, %34 : vector<1x32x1xf32>
    %36 = arith.subf %35, %22 : vector<1x32x1xf32>
    %37 = math.exp %36 : vector<1x32x1xf32>
    %38 = arith.mulf %37, %28 : vector<1x32x1xf32>
    %39 = vector.broadcast %38 : vector<1x32x1xf32> to vector<1x32x16xf32>
    %40 = arith.mulf %39, %9 : vector<1x32x16xf32>
    %c0_12 = arith.constant 0 : index
    %c0_13 = arith.constant 0 : index
    %c0_14 = arith.constant 0 : index
    %41 = vector.load %arg3[%c0_12, %c0_13, %c0_14] : memref<1x32x16xf32, #tpu.memory_space<vmem>>, vector<1x32x16xf32>
    tpu.vector_store %arg3[%c0_12, %c0_13, %c0_14], %40 {strides = array<i32>} : memref<1x32x16xf32, #tpu.memory_space<vmem>>, vector<1x32x16xf32>,
    %c0_15 = arith.constant 0 : index
    %c0_16 = arith.constant 0 : index
    %c0_17 = arith.constant 0 : index
    %42 = vector.load %arg4[%c0_15, %c0_16, %c0_17] : memref<1x32x32xf32, #tpu.memory_space<vmem>>, vector<1x32x32xf32>
    tpu.vector_store %arg4[%c0_15, %c0_16, %c0_17], %30 {strides = array<i32>} : memref<1x32x32xf32, #tpu.memory_space<vmem>>, vector<1x32x32xf32>,
    return
  }
  func.func @transform_0(%arg0: i32) -> (i32, i32, i32) {
    %c0_i32 = arith.constant 0 : i32
    %c0_i32_0 = arith.constant 0 : i32
    %c0_i32_1 = arith.constant 0 : i32
    return %arg0, %c0_i32, %c0_i32_0 : i32, i32, i32
  }
  func.func @transform_1(%arg0: i32) -> (i32, i32) {
    %c0_i32 = arith.constant 0 : i32
    %c0_i32_0 = arith.constant 0 : i32
    %c0_i32_1 = arith.constant 0 : i32
    return %c0_i32, %c0_i32_0 : i32, i32
  }
  func.func @transform_2(%arg0: i32) -> (i32, i32, i32) {
    %c0_i32 = arith.constant 0 : i32
    %c0_i32_0 = arith.constant 0 : i32
    %c0_i32_1 = arith.constant 0 : i32
    return %arg0, %c0_i32, %c0_i32_0 : i32, i32, i32
  }
  func.func @transform_3(%arg0: i32) -> (i32, i32, i32) {
    %c0_i32 = arith.constant 0 : i32
    %c0_i32_0 = arith.constant 0 : i32
    %c0_i32_1 = arith.constant 0 : i32
    return %arg0, %c0_i32, %c0_i32_0 : i32, i32, i32
  }
}

</mosaic_0001>

<bundles_post_ra>
// kernel: tpu_custom_call.1
= control target key start
LH: loop header
LB: loop body
LE: loop exit
PB: predicated region body
PF: predicated region fallthrough
CT: control target
= control target key end

     0   :  { %9 = vsyncpa [#allocation3], 0  ;;  %s1321_s0 = inlined_call_operand.hbm [shape: f32[2,32,32], index: 0, kind: input, shape index: {}]   ;;  %s1322_s1 = inlined_call_operand.hbm [shape: f32[32,48], index: 1, kind: input, shape index: {}]   ;;  %s1323_s2 = inlined_call_operand.vmem [shape: f32[2,32,16], index: 2, kind: output, shape index: {0}]   ;;  %s1324_s3 = inlined_call_operand.hbm [shape: f32[2,32,32], index: 3, kind: output, shape index: {1}]  }
   0x1   :  { %11 = vsyncpa [#allocation3 + $0x1], 0 }
   0x2   :  { %12 = vsyncpa [#allocation6], 0 }
   0x3   :  { %13 = vsyncpa [#allocation4], 0 }
   0x4   :  { %15 = vsyncpa [#allocation4 + $0x1], 0  ;;  %s1047_s12 = smov 0   ;;  %s1049_s13 = smov 0  }
   0x5   :  { %s1051_s14 = smov 0   ;;  %s1053_s15 = smov 0  }
   0x6 LB: > { %s1068_s16 = sadd.s32 4294967295, %s1015_s15   ;;  %s702_s17 = sadd.s32 4294967294, %s1015_s15   ;;  %s1015_s15 = sphi %s1053_s15, %s1344_s15   ;;  %s1011_s14 = sphi %s1051_s14, %s1343_s14   ;;  %s1007_s13 = sphi %s1049_s13, %s1342_s13   ;;  %s1003_s12 = sphi %s1047_s12, %s1341_s12  }
   0x7   : > { %p41_p0 = scmp.ne.s32.totalorder %s1007_s13, %s1003_s12  ;;  %p1325_p1 = scmp.eq.s32.totalorder %s1068_s16, 0 }
   0x8   : > { %p118_p3 = scmp.eq.s32.totalorder %s702_s17, 1  ;;  %p703_p5 = scmp.ge.s32.totalorder %s1015_s15, 1 }
   0x9   : > { %p1077_p4 = por %p1325_p1, %p41_p0  ;;  %p125_p7 = scmp.lt.s32.totalorder %s1015_s15, 3 }
   0xa   : > { %p1082_p6 = por %p118_p3, %p41_p0  ;;  %s1017_s21 = smov [#allocation5]  }
   0xb   : > { %s1328_s18 = scalar_select %p1077_p4, 1, 0 }
   0xc   : > { %s1329_s19 = scalar_select %p1082_p6, 1, 0 }
   0xd   : > { %p1087_p8 = pnand %p703_p5, %p125_p7  ;;  %s137_s22 = sshll.u32 %s1017_s21, 4  ;;  %s1091_s22 = int_to_ptr.vmem [resolvable:$true] %s137_s22 }
   0xe   : > { %s1103_s24 = sadd.s32 1, %s1015_s15   ;;  %s28_s25 = sadd.s32 1, %s1011_s14 }
   0xf   : > { %s1330_s20 = scalar_select %p1087_p8, 1, 0 }
  0x10   : > { %p807_p9 = pneg %p1087_p8  ;;  %s25_s26 = ssub.s32 %s1015_s15, %s1103_s24 }
  0x11   : > { %s887_s29 = scalar_lea.hbm %s1322_s1, 512 }
  0x12   : > { %p1098_p11 = pnand %p807_p9, %p1325_p1  ;;  %p888_p12 = scmp.ne.s32.totalorder %s1322_s1, %s887_s29 }
  0x13   : > { %p894_p5 = scmp.lt.u32.totalorder %s887_s29, %s1322_s1 }
  0x14   : > { %p889_p13 = pneg %p1098_p11 }
  0x16   : > { %p890_p0 = pnand %p889_p13, %p888_p12 }
  0x18   : > { %p891_p3 = pneg %p890_p0 }
  0x1a   : > { %p896_p7 = pnand %p894_p5, %p891_p3 }
  0x1c   : > { %899 = shalt.err (!%p896_p7)
}
  0x1d   : > { %s900_s7 = scalar_lea.vmem %s1091_s22, 512  ;;  %p908_p2 = scmp.lt.s32.totalorder %s1091_s22, %s1091_s22 }
  0x1e   : > { %p901_p9 = scmp.ne.s32.totalorder %s1091_s22, %s900_s7  ;;  %p909_p6 = scmp.lt.s32.totalorder %s900_s7, %s900_s7 }
  0x20   : > { %p903_p10 = pnand %p901_p9, %p889_p13  ;;  %p910_p4 = por %p909_p6, %p908_p2 }
  0x22   : > { %p904_p1 = pneg %p903_p10 }
  0x24   : > { %p911_p8 = pnand %p910_p4, %p904_p1 }
  0x26   : > { %914 = shalt.err (!%p911_p8)
}
  0x27   : > { %s1018_s8 = smov 128   ;;  %s1019_s9 = smov 8  }
  0x28   : > { %810 = dma.hbm_to_vmem [thread:$0]  (!%p1098_p11), %s1322_s1, 512, %s1091_s22, [#allocation6], %s1018_s8, %s1018_s8, %s1019_s9  }
  0x29   : > { %p26_p1 = scmp.eq.s32.totalorder %s25_s26, 0  ;;  %p35_p2 = scmp.ne.s32.totalorder %s1011_s14, %s1007_s13 }
  0x2a   : > { %p36_p4 = scmp.eq.s32.totalorder %s1015_s15, 0  ;;  %p820_p6 = scmp.lt.s32.totalorder %s1015_s15, 2 }
  0x2b   : > { %s1137_s17 = scalar_select %p26_p1, %s1011_s14, %s28_s25  }
  0x2c   : > { %p37_p8 = por %p36_p4, %p35_p2  ;;  %p1332_p10 = scmp.eq.s32.totalorder %s1068_s16, 1 }
  0x2d   : > { %s151_s23 = sand.u32 1, %s1011_s14   ;;  %s732_s27 = sshll.u32 %s1015_s15, 9 }
  0x2e   : > { %p1141_p12 = por %p1332_p10, %p35_p2  ;;  %s706_s28 = sshll.u32 %s151_s23, 5 }
  0x2f   : > { %s1150_s4 = scalar_lea.hbm %s1321_s0, %s732_s27  ;;  %s155_s22 = scalar_lea.vmem [#allocation2], %s706_s28 }
  0x30   : > { %s162_s25 = sshll.u32 %s155_s22, 4  ;;  %p1152_p11 = pnand %p820_p6, %p37_p8  ;;  %s1156_s25 = int_to_ptr.vmem [resolvable:$true] %s162_s25 }
  0x31   : > { %s1158_s5 = scalar_lea.sflag [#allocation3], %s151_s23  ;;  %s915_s6 = scalar_lea.hbm %s1150_s4, 512 }
  0x32   : > { %p916_p13 = scmp.ne.s32.totalorder %s1150_s4, %s915_s6  ;;  %p917_p0 = pneg %p1152_p11 }
  0x33   : > { %s920_s11 = scalar_lea.hbm %s1321_s0, 1024  ;;  %p921_p7 = scmp.lt.u32.totalorder %s1150_s4, %s1321_s0 }
  0x34   : > { %p918_p3 = pnand %p917_p0, %p916_p13  ;;  %p922_p9 = scmp.lt.u32.totalorder %s920_s11, %s915_s6 }
  0x35   : > { %p924_p2 = scmp.lt.u32.totalorder %s915_s6, %s1150_s4 }
  0x36   : > { %p919_p5 = pneg %p918_p3  ;;  %p923_p1 = por %p922_p9, %p921_p7 }
  0x38   : > { %p925_p4 = por %p924_p2, %p923_p1 }
  0x3a   : > { %p926_p6 = pnand %p925_p4, %p919_p5 }
  0x3c   : > { %929 = shalt.err (!%p926_p6)
}
  0x3d   : > { %s930_s23 = scalar_lea.vmem %s1156_s25, 512  ;;  %s1020_s29 = smov [#allocation2]  }
  0x3e   : > { %p931_p8 = scmp.ne.s32.totalorder %s1156_s25, %s930_s23  ;;  %s935_s30 = sshll.u32 %s1020_s29, 4  ;;  %s936_s30 = int_to_ptr.vmem [resolvable:$false] %s935_s30 }
  0x3f   : > { %s937_s22 = scalar_lea.vmem %s936_s30, 1024  ;;  %p938_p3 = scmp.lt.s32.totalorder %s1156_s25, %s936_s30 }
  0x40   : > { %p933_p10 = pnand %p931_p8, %p917_p0  ;;  %p939_p7 = scmp.lt.s32.totalorder %s937_s22, %s930_s23 }
  0x42   : > { %p934_p13 = pneg %p933_p10  ;;  %p940_p9 = por %p939_p7, %p938_p3 }
  0x44   : > { %p941_p1 = pnand %p940_p9, %p934_p13 }
  0x46   : > { %944 = shalt.err (!%p941_p1)
}
  0x47   : > { %814 = dma.hbm_to_vmem [thread:$0]  (!%p1152_p11), %s1150_s4, 512, %s1156_s25, %s1158_s5, %s1018_s8, %s1018_s8, %s1019_s9  }
  0x48   : > { %p1335_p0 = scmp.ne.s32.totalorder %s1330_s20, 0 }
  0x49   : > { %s1192_s6 = sand.u32 (!%p1335_p0), 1, %s1007_s13   ;;  %p1336_p5 = scmp.ne.s32.totalorder (!%p1335_p0), %s1328_s18, 0 }
  0x4a   : > { %174 = sbr.rel (%p1335_p0) target bundleno = 1096 (0x448), region = 28  ;;  %s710_s7 = sshll.u32 (!%p1335_p0), %s1192_s6, 5 }
  0x4b   : > { %s177_s10 = scalar_lea.sflag (!%p1335_p0), [#allocation3], %s1192_s6  ;;  %s180_s26 = scalar_lea.vmem (!%p1335_p0), [#allocation2], %s710_s7 }
  0x51   : > { %990 = dma.done.wait (%p1336_p5), %s177_s10, 512  }
  0x52   : > { %992 = vsyncadd (%p1336_p5), %s177_s10, 4294966784  ;;  %p1337_p11 = scmp.eq.s32.totalorder %s1068_s16, 0 }
  0x54   : > { %994 = dma.done.wait (%p1337_p11), [#allocation6], 512   ;;  %p1338_p2 = pmov %p1337_p11 }
  0x55   : > { %vm225_vm0 = vcmask 261120   ;;  %v221_v0 = vld [vmem:[#allocation5] sm:$0xff]  ;;  %v222_v1 = vld [vmem:[#allocation5 + $0x8] sm:$0xff]  ;;  %v223_v2 = vld [vmem:[#allocation5 + $0x10] sm:$0xff]  ;;  %vm335_vm1 = vcmask 130048   ;;  %s1021_s18 = smov 112   ;;  %v441_v22 = vlaneseq }
  0x56   : > { %996 = vsyncadd (%p1338_p2), [#allocation6], 4294966784  ;;  %v779_v3 = vpack.c.bf16 %v222_v1, %v221_v0  ;;  %v224_v4 = vld [vmem:[#allocation5 + $0x18] sm:$0xff]  ;;  %v217_v5 = vld [vmem:[%s180_s26] sm:$0xff]  ;;  %v1022_v28 = vmov 0.0   ;;  %s211_s20 = scalar_lea.vmem [#allocation7], %s710_s7 }
  0x57   : > { %v783_v6 = vpack.c.bf16 %v224_v4, %v223_v2  ;;  %759 = vmatprep.mubr.msk.f32.mxu0 %vm225_vm0, %v217_v5  ;;  %v218_v7 = vld [vmem:[%s180_s26 + $0x8] sm:$0xff]  ;;  %v219_v8 = vld [vmem:[%s180_s26 + $0x10] sm:$0xff]  ;;  %v220_v9 = vld [vmem:[%s180_s26 + $0x18] sm:$0xff]  ;;  %v442_v23 = vshrl.u32 %v441_v22, 7  ;;  %v447_v24 = vand.u32 127, %v441_v22  ;;  %s1023_s8 = smov 96  }
  0x58   : > { %780 = vmatprep.subr.bf16.mxu0 %v779_v3  ;;  %vm788_vm2 = vmpackc.low %vm335_vm1, %vm335_vm1  ;;  %s734_s9 = sshll.u32 %s1068_s16, 9  ;;  %s594_s4 = sshll.u32 %s211_s20, 4  ;;  %s1264_s4 = int_to_ptr.vmem [resolvable:$true] %s594_s4 }
  0x59   : > { %782 = vmatpush3.bf16.msra.mxu0 %v779_v3  ;;  %v443_v25 = vadd.s32 8, %v442_v23  ;;  %v444_v26 = vadd.s32 16, %v442_v23  ;;  %vm448_vm4 = vcmp.gt.s32.totalorder %v447_v24, %v442_v23  ;;  %v445_v30 = vadd.s32 24, %v442_v23  ;;  %s1262_s11 = scalar_lea.hbm %s1324_s3, %s734_s9  ;;  %s578_s27 = scalar_lea.sflag [#allocation4], %s1192_s6 }
  0x5a   : > { %784 = vmatprep.subr.bf16.mxu0 %v783_v6  ;;  %v452_v33 = vsel %vm448_vm4, -1e+30, %v1022_v28  ;;  %s945_s28 = scalar_lea.vmem %s1264_s4, 512  ;;  %s1024_s23 = smov [#allocation7]  }
  0x5b   : > { %vm449_vm3 = vcmp.gt.s32.totalorder %v447_v24, %v443_v25  ;;  %vm450_vm5 = vcmp.gt.s32.totalorder %v447_v24, %v444_v26  ;;  %vm451_vm6 = vcmp.gt.s32.totalorder %v447_v24, %v445_v30  ;;  %p946_p4 = scmp.ne.s32.totalorder %s1264_s4, %s945_s28  ;;  %s949_s29 = sshll.u32 %s1024_s23, 4  ;;  %s950_s29 = int_to_ptr.vmem [resolvable:$false] %s949_s29 }
  0x5c   : > { %v453_v29 = vsel %vm449_vm3, -1e+30, %v1022_v28  ;;  %v454_v39 = vsel %vm450_vm5, -1e+30, %v1022_v28  ;;  %v455_v44 = vsel %vm451_vm6, -1e+30, %v1022_v28  ;;  %p952_p10 = scmp.lt.s32.totalorder %s1264_s4, %s950_s29 }
  0x5d   : > { %786 = vmatpush3.bf16.msra.mxu0 %v783_v6  ;;  %p947_p6 = pnand %p946_p4, %p1141_p12  ;;  %s951_s30 = scalar_lea.vmem %s950_s29, 1024 }
  0x5e   : > { %p953_p13 = scmp.lt.s32.totalorder %s951_s30, %s945_s28 }
  0x5f   : > { %p948_p8 = pneg %p947_p6 }
  0x60   : > { %760 = vmatmul.mubr.msk.f32.vlgmr.msra.gmra.mrb[0].mxu0 %vm225_vm0, %v218_v7  ;;  %p954_p3 = por %p953_p13, %p952_p10 }
  0x61   : > { %762 = vmatprep.mubr.msk.f32.mxu0 %vm225_vm0, %v219_v8 }
  0x62   : > { %p955_p7 = pnand %p954_p3, %p948_p8 }
  0x64   : > { %763 = vmatmul.mubr.msk.f32.gmra.mrb[2].mxu0 %vm225_vm0, %v220_v9 }
 0x133   : > { %v1210_v10 = vpop.f32.mrb[0].mxu0 }
 0x134   : > { %v1212_v11 = vpop.f32.mrb[1].mxu0 }
 0x135   : > { %327 = vrot.lane.b32.xlu0 %v1212_v11, %s1021_s18  ;;  %v787_v12 = vpack.c.bf16 %v1210_v10, %v1212_v11 }
 0x137   : > { %v1219_v13 = vpop.f32.mrb[2].mxu0  ;;  %789 = vmatprep.subr.msk.bf16.mxu1 %vm788_vm2, %v787_v12 }
 0x138   : > { %v1221_v14 = vpop.f32.mrb[3].mxu0  ;;  %792 = vmatpush3.bf16.xpose.msk.msra.mxu1 %vm788_vm2, %v787_v12 }
 0x139   : > { %v793_v15 = vpack.c.bf16 %v1219_v13, %v1221_v14  ;;  %329 = vrot.lane.b32.xlu0 %v1210_v10, %s1021_s18  ;;  %331 = vrot.lane.b32.xlu1 %v1221_v14, %s1021_s18 }
 0x13b   : > { %795 = vmatprep.subr.msk.bf16.mxu1 %vm788_vm2, %v793_v15 }
 0x13d   : > { %333 = vrot.lane.b32.xlu1 %v1219_v13, %s1021_s18 }
 0x140   : > { %798 = vmatpush3.bf16.xpose.msk.msra.mxu1 %vm788_vm2, %v793_v15 }
 0x1a7   : > { %v328_v16 = vpop.permute.xlu0 %327 }
 0x1a8   : > { %v508_v17 = vmul.f32 %v328_v16, %v1212_v11  ;;  %773 = vmatprep.mubr.msk.f32.mxu1 %vm335_vm1, %v328_v16 }
 0x1aa   : > { %v512_v46 = vsel %vm335_vm1, %v508_v17, 0.0 }
 0x1ab   : > { %v330_v18 = vpop.permute.xlu0 %329  ;;  %v332_v19 = vpop.permute.xlu1 %331 }
 0x1ac   : > { %v510_v20 = vmul.f32 %v332_v19, %v1221_v14  ;;  %774 = vmatmul.mubr.msk.f32.vlgmr.msra.gmra.mrb[0].mxu1 %vm335_vm1, %v330_v18  ;;  %v509_v50 = vmul.f32 %v1210_v10, %v330_v18 }
 0x1ad   : > { %776 = vmatprep.mubr.msk.f32.mxu1 %vm335_vm1, %v332_v19 }
 0x1ae   : > { %v518_v49 = vsel %vm335_vm1, %v510_v20, 0.0  ;;  %v515_v53 = vsel %vm335_vm1, %v509_v50, 0.0 }
 0x1af   : > { %v334_v21 = vpop.permute.xlu1 %333 }
 0x1b0   : > { %777 = vmatmul.mubr.msk.f32.gmra.mrb[2].mxu1 %vm335_vm1, %v334_v21  ;;  %v511_v52 = vmul.f32 %v1219_v13, %v334_v21 }
 0x1b2   : > { %v521_v54 = vsel %vm335_vm1, %v511_v52, 0.0 }
 0x27f   : > { %v775_v27 = vpop.f32.mrb[0].mxu1 }
 0x280   : > { %v438_v31 = vmul.f32 0.17677669, %v775_v27  ;;  %v418_v32 = vpop.f32.mrb[1].mxu1 }
 0x281   : > { %v437_v34 = vmul.f32 0.17677669, %v418_v32 }
 0x282   : > { %v457_v35 = vadd.f32 %v453_v29, %v438_v31 }
 0x283   : > { %v778_v36 = vpop.f32.mrb[2].mxu1  ;;  %v456_v37 = vadd.f32 %v452_v33, %v437_v34 }
 0x284   : > { %v428_v38 = vpop.f32.mrb[3].mxu1  ;;  %v463_v40 = vsel %vm225_vm0, %v457_v35, -inf  ;;  %v440_v41 = vmul.f32 0.17677669, %v778_v36 }
 0x285   : > { %v439_v42 = vmul.f32 0.17677669, %v428_v38  ;;  %464 = vmax.xlane.f32.xlu1 %v463_v40  ;;  %v460_v43 = vsel %vm225_vm0, %v456_v37, -inf }
 0x286   : > { %461 = vmax.xlane.f32.xlu0 %v460_v43  ;;  %v459_v48 = vadd.f32 %v455_v44, %v440_v41 }
 0x287   : > { %v458_v45 = vadd.f32 %v454_v39, %v439_v42 }
 0x288   : > { %v469_v51 = vsel %vm225_vm0, %v459_v48, -inf }
 0x289   : > { %513 = vadd.xlane.f32.xlu1 %v512_v46  ;;  %v466_v47 = vsel %vm225_vm0, %v458_v45, -inf }
 0x28a   : > { %467 = vmax.xlane.f32.xlu0 %v466_v47 }
 0x28d   : > { %519 = vadd.xlane.f32.xlu1 %v518_v49 }
 0x28e   : > { %470 = vmax.xlane.f32.xlu0 %v469_v51 }
 0x292   : > { %516 = vadd.xlane.f32.xlu0 %v515_v53 }
 0x296   : > { %522 = vadd.xlane.f32.xlu0 %v521_v54 }
 0x312   : > { %v465_v55 = vpop.xlane.xlu1 %464 }
 0x313   : > { %v473_v56 = vsub.f32 %v457_v35, %v465_v55  ;;  %v462_v57 = vpop.xlane.xlu0 %461 }
 0x314   : > { %v472_v58 = vsub.f32 %v456_v37, %v462_v57 }
 0x315   : > { %v478_v59 = vmul.f32 1.442695, %v473_v56 }
 0x316   : > { %v476_v60 = vmul.f32 1.442695, %v472_v58  ;;  %v514_v15 = vpop.xlane.xlu1 %513 }
 0x317   : > { %863 = vpow2.f32 %v478_v59  ;;  %v468_v61 = vpop.xlane.xlu0 %467  ;;  %v524_v17 = vmul.f32 0.17677669, %v514_v15 }
 0x318   : > { %865 = vpow2.f32 %v476_v60  ;;  %v474_v62 = vsub.f32 %v458_v45, %v468_v61 }
 0x319   : > { %v528_v20 = vsub.f32 %v524_v17, %v462_v57 }
 0x31a   : > { %v480_v63 = vmul.f32 1.442695, %v474_v62  ;;  %v520_v19 = vpop.xlane.xlu1 %519 }
 0x31b   : > { %v471_v0 = vpop.xlane.xlu0 %470  ;;  %v526_v22 = vmul.f32 0.17677669, %v520_v19  ;;  %v532_v24 = vmul.f32 1.442695, %v528_v20 }
 0x31c   : > { %867 = vpow2.f32 %v480_v63  ;;  %v475_v1 = vsub.f32 %v459_v48, %v471_v0 }
 0x31d   : > { %v530_v26 = vsub.f32 %v526_v22, %v468_v61 }
 0x31e   : > { %v482_v2 = vmul.f32 1.442695, %v475_v1 }
 0x31f   : > { %v517_v16 = vpop.xlane.xlu0 %516  ;;  %v536_v29 = vmul.f32 1.442695, %v530_v26 }
 0x320   : > { %869 = vpow2.f32 %v482_v2  ;;  %v525_v18 = vmul.f32 0.17677669, %v517_v16 }
 0x321   : > { %v864_v3 = vpop.eup %863  ;;  %871 = vpow2.f32 %v532_v24 }
 0x322   : > { %v866_v4 = vpop.eup %865  ;;  %v487_v5 = vsel %vm225_vm0, %v864_v3, 0.0  ;;  %v529_v21 = vsub.f32 %v525_v18, %v465_v55 }
 0x323   : > { %488 = vadd.xlane.f32.xlu0 %v487_v5  ;;  %v484_v6 = vsel %vm225_vm0, %v866_v4, 0.0  ;;  %v523_v23 = vpop.xlane.xlu0 %522 }
 0x324   : > { %485 = vadd.xlane.f32.xlu1 %v484_v6  ;;  %v534_v25 = vmul.f32 1.442695, %v529_v21  ;;  %v527_v27 = vmul.f32 0.17677669, %v523_v23 }
 0x326   : > { %v868_v7 = vpop.eup %867  ;;  %873 = vpow2.f32 %v534_v25  ;;  %v531_v30 = vsub.f32 %v527_v27, %v471_v0 }
 0x327   : > { %v490_v8 = vsel %vm225_vm0, %v868_v7, 0.0 }
 0x328   : > { %491 = vadd.xlane.f32.xlu1 %v490_v8  ;;  %v538_v32 = vmul.f32 1.442695, %v531_v30 }
 0x32a   : > { %v870_v9 = vpop.eup %869 }
 0x32b   : > { %v493_v12 = vsel %vm225_vm0, %v870_v9, 0.0  ;;  %v872_v34 = vpop.eup %871 }
 0x32c   : > { %494 = vadd.xlane.f32.xlu0 %v493_v12 }
 0x330   : > { %v874_v36 = vpop.eup %873 }
 0x3b0   : > { %v489_v28 = vpop.xlane.xlu0 %488 }
 0x3b1   : > { %875 = vrcp.f32 %v489_v28  ;;  %v486_v31 = vpop.xlane.xlu1 %485 }
 0x3b2   : > { %877 = vrcp.f32 %v486_v31 }
 0x3b3   : > { %879 = vpow2.f32 %v536_v29 }
 0x3b5   : > { %v492_v33 = vpop.xlane.xlu1 %491 }
 0x3b6   : > { %881 = vrcp.f32 %v492_v33 }
 0x3b7   : > { %883 = vpow2.f32 %v538_v32 }
 0x3b9   : > { %v495_v35 = vpop.xlane.xlu0 %494 }
 0x3ba   : > { %885 = vrcp.f32 %v495_v35 }
 0x3bb   : > { %v876_v37 = vpop.eup %875 }
 0x3bc   : > { %v878_v38 = vpop.eup %877  ;;  %v501_v39 = vmul.f32 %v876_v37, %v864_v3  ;;  %v541_v40 = vmul.f32 %v876_v37, %v874_v36 }
 0x3bd   : > { %v500_v41 = vmul.f32 %v878_v38, %v866_v4  ;;  %v540_v42 = vmul.f32 %v878_v38, %v872_v34  ;;  %v880_v44 = vpop.eup %879 }
 0x3be   : > { %569 = vst.msk [vmem:[%s211_s20 + $0x8] sm:$0xff] %vm225_vm0, %v501_v39  ;;  %v545_v43 = vmul.f32 %v1210_v10, %v541_v40 }
 0x3bf   : > { %568 = vst.msk [vmem:[%s211_s20] sm:$0xff] %vm225_vm0, %v500_v41  ;;  %v544_v45 = vmul.f32 %v540_v42, %v1212_v11 }
 0x3c0   : > { %v882_v46 = vpop.eup %881  ;;  %554 = vrot.lane.b32.xlu0 %v545_v43, %s1023_s8 }
 0x3c1   : > { %v502_v47 = vmul.f32 %v882_v46, %v868_v7  ;;  %552 = vrot.lane.b32.xlu1 %v544_v45, %s1023_s8  ;;  %v542_v48 = vmul.f32 %v882_v46, %v880_v44  ;;  %v884_v49 = vpop.eup %883 }
 0x3c3   : > { %570 = vst.msk [vmem:[%s211_s20 + $0x10] sm:$0xff] %vm225_vm0, %v502_v47  ;;  %v546_v10 = vmul.f32 %v542_v48, %v1221_v14 }
 0x3c4   : > { %v886_v50 = vpop.eup %885 }
 0x3c5   : > { %v503_v11 = vmul.f32 %v886_v50, %v870_v9  ;;  %556 = vrot.lane.b32.xlu1 %v546_v10, %s1023_s8  ;;  %v543_v51 = vmul.f32 %v886_v50, %v884_v49 }
 0x3c7   : > { %571 = vst.msk [vmem:[%s211_s20 + $0x18] sm:$0xff] %vm225_vm0, %v503_v11  ;;  %v547_v52 = vmul.f32 %v1219_v13, %v543_v51 }
 0x3c8   : > { %958 = shalt.err (!%p955_p7)
}
 0x3c9   : > { %s959_s22 = scalar_lea.hbm %s1262_s11, 512  ;;  %s963_s26 = scalar_lea.hbm %s1324_s3, 1024 }
 0x3ca   : > { %p960_p9 = scmp.ne.s32.totalorder %s1262_s11, %s959_s22  ;;  %p964_p5 = scmp.lt.u32.totalorder %s1262_s11, %s1324_s3 }
 0x3cb   : > { %p965_p11 = scmp.lt.u32.totalorder %s963_s26, %s959_s22  ;;  %p967_p4 = scmp.lt.u32.totalorder %s959_s22, %s1262_s11 }
 0x3cc   : > { %p961_p1 = pnand %p960_p9, %p1141_p12 }
 0x3cd   : > { %p966_p2 = por %p965_p11, %p964_p5 }
 0x3ce   : > { %p962_p0 = pneg %p961_p1 }
 0x3cf   : > { %p968_p6 = por %p967_p4, %p966_p2 }
 0x3d1   : > { %p969_p8 = pnand %p968_p6, %p962_p0 }
 0x3d3   : > { %972 = shalt.err (!%p969_p8)
}
 0x3d4   : > { %s1025_s9 = smov 128   ;;  %s1026_s25 = smov 8   ;;  %558 = vrot.lane.b32.xlu1 %v547_v52, %s1023_s8 }
 0x3d5   : > { %805 = dma.vmem_to_hbm [thread:$0]  (%p1141_p12), %s1264_s4, 512, %s1262_s11, %s578_s27, %s1025_s9, %s1025_s9, %s1026_s25  }
 0x3d6   : > { %p212_p10 = scmp.lt.s32.totalorder %s1068_s16, 1 }
 0x3d8   : > { %s1346_s16 = smov (!%p212_p10, %s1068_s16), 1 }
 0x3d9   : > { %s733_s5 = sshll.u32 %s1346_s16, 5 }
 0x3da   : > { %s216_s29 = scalar_lea.vmem %s1323_s2, %s733_s5 }
 0x432   : > { %v555_v13 = vpop.permute.xlu0 %554 }
 0x433   : > { %565 = vst.msk [vmem:[%s216_s29 + $0x8] sm:$0xff] %vm335_vm1, %v555_v13  ;;  %v553_v14 = vpop.permute.xlu1 %552 }
 0x434   : > { %564 = vst.msk [vmem:[%s216_s29] sm:$0xff] %vm335_vm1, %v553_v14 }
 0x437   : > { %v557_v53 = vpop.permute.xlu1 %556 }
 0x438   : > { %566 = vst.msk [vmem:[%s216_s29 + $0x10] sm:$0xff] %vm335_vm1, %v557_v53 }
 0x446   : > { %v559_v54 = vpop.permute.xlu1 %558 }
 0x447   : > { %567 = vst.msk [vmem:[%s216_s29 + $0x18] sm:$0xff] %vm335_vm1, %v559_v54 }
 0x448 PF: > { %s617_s16 = sand.u32 1, %s1003_s12   ;;  %p1339_p12 = scmp.ne.s32.totalorder %s1329_s19, 0 }
 0x449   : > { %p1340_p13 = scmp.ge.s32.totalorder %s1015_s15, 2  ;;  %s618_s21 = scalar_lea.sflag [#allocation4], %s617_s16 }
 0x44b   : > { %p816_p3 = pnand %p1340_p13, %p1339_p12 }
 0x44d   : > { %998 = dma.done.wait (!%p816_p3), %s618_s21, 512  }
 0x44e   : > { %1000 = vsyncadd (!%p816_p3), %s618_s21, 4294966784  ;;  %p18_p7 = scmp.ge.s32.totalorder %s1103_s24, 4   ;;  %s1341_s12 = smov %s1007_s13 }
 0x44f   : > { %s1342_s13 = smov %s1011_s14  ;;  %s1343_s14 = smov %s1137_s17 }
 0x450   : > { %s1344_s15 = smov %s1103_s24  ;;  %20 = sbr.rel (!%p18_p7) target bundleno = 6 (0x6), region = 89 }
 0x457   :  { %623 = vsyncpa [#allocation3], 1 }
 0x458   :  { %625 = vsyncpa [#allocation3 + $0x1], 1 }
 0x459   :  { %626 = vsyncpa [#allocation6], 1 }
 0x45a   :  { %627 = vsyncpa [#allocation4], 1 }
 0x45b   :  { %629 = vsyncpa [#allocation4 + $0x1], 1 }

</bundles_post_ra>
